<compile_context>
chip_gen: v7x
topology: tpu7x:2x2x1
jax: 0.10.0
libtpu: 0.0.40
codegen_flags: <defaults>
</compile_context>

<pallas_src>
import jax
import jax.numpy as jnp
from jax import lax
from jax.experimental import pallas as pl
from jax.experimental.pallas import tpu as pltpu


def _round_up(x, m):
    return ((x + m - 1) // m) * m


def fold_params(emb_table, fc_w):
    """Fold Linear(D,1) into the embedding table: proj[v] = emb[v] . w.

    Call ONCE at parameter-load time and reuse `proj` across forward calls
    (per review: the fold must not be paid per call)."""
    return jnp.dot(emb_table.astype(jnp.float32),
                   fc_w.astype(jnp.float32).reshape(-1))          # [V] f32


def _make_kernel(S, CH, B_TILE, inv_S):
    """Kernel factory closing over static shape parameters."""

    def kernel(ids_ref, proj_ref, bias_ref, out_ref):
        c = pl.program_id(0)          # sequence-chunk index (core-parallel)
        i = pl.program_id(1)          # batch-tile index

        s_start = c * CH              # each chunk has static length CH (CH*NC == S)
        lane = lax.broadcasted_iota(jnp.int32, (1, 1, B_TILE), 2)

        def col_body(b, row):
            bg = i * B_TILE + b       # global (padded) batch column

            def seq_body(k, acc):
                tok = ids_ref[s_start + k, bg]       # SMEM scalar load
                return acc + proj_ref[tok]           # SMEM gather + f32 add

            acc = lax.fori_loop(0, CH, seq_body, jnp.float32(0.0),
                                unroll=min(CH, 8))
            # Scale each chunk partial by 1/S so the cross-chunk sum is the mean.
            return jnp.where(lane == b, acc * inv_S, row)

        row = lax.fori_loop(0, B_TILE, col_body,
                            jnp.zeros((1, 1, B_TILE), jnp.float32))
        # Add the bias exactly once (chunk 0 only); lane-dense single store.
        out_ref[...] = row + jnp.where(c == 0, bias_ref[0, 0], 0.0)

    return kernel


def baseline_forward(x_ids, proj, fc_b, lens=None, lengths=None):
    """x_ids: [S, B] int token ids; proj: [V] folded table (see fold_params);
    fc_b: Linear(D,1) bias. Returns [B] float32. lens/lengths unused (as in torch)."""
    S, B = x_ids.shape

    # --- batch tiling: one tile for small B, 128-wide lane tiles for large B.
    if B > 128:
        B_TILE = 128
        B_pad = _round_up(B, B_TILE)
    else:
        B_TILE = B
        B_pad = B
    ids = x_ids.astype(jnp.int32)
    if B_pad != B:
        ids = jnp.pad(ids, ((0, 0), (0, B_pad - B)))   # pad cols with token 0

    NB = B_pad // B_TILE
    # Split the sequence reduction into 2 chunks when the batch axis cannot
    # feed v7x's 2nd TensorCore (NB == 1).  Requires an even split of S.
    NC = 2 if (NB == 1 and S >= 8 and S % 2 == 0) else 1
    CH = S // NC
    inv_S = 1.0 / S

    bias = jnp.asarray(fc_b, jnp.float32).reshape(1, 1)
    kernel = _make_kernel(S, CH, B_TILE, inv_S)

    partials = pl.pallas_call(
        kernel,
        out_shape=jax.ShapeDtypeStruct((NC, 1, B_pad), jnp.float32),
        grid_spec=pltpu.PrefetchScalarGridSpec(
            num_scalar_prefetch=0,
            grid=(NC, NB),
            in_specs=[
                pl.BlockSpec(memory_space=pltpu.MemorySpace.SMEM),  # ids  [S, B_pad]
                pl.BlockSpec(memory_space=pltpu.MemorySpace.SMEM),  # proj [V]
                pl.BlockSpec(memory_space=pltpu.MemorySpace.SMEM),  # bias [1, 1]
            ],
            out_specs=pl.BlockSpec((1, 1, B_TILE), lambda c, i: (c, 0, i)),
        ),
        compiler_params=pltpu.CompilerParams(
            dimension_semantics=("parallel", "parallel")),
    )(ids, proj.astype(jnp.float32), bias)

    out = jnp.sum(partials, axis=0)[0]      # [B_pad]; chunks already carry 1/S
    return out[:B]


def reference_forward(x_ids, emb_table, fc_w, fc_b):
    embedded = jnp.take(emb_table, x_ids, axis=0)          # [S, B, D]
    average = embedded.mean(axis=0)                        # [B, D]
    return (average @ fc_w.T + fc_b.reshape(1, 1))[:, 0]   # [B]


if __name__ == "__main__":
    VOCAB = 64
    EMB_DIM = 32
    SEQ = 8
    BATCH = 4

    key = jax.random.PRNGKey(0)
    k_emb, k_w, k_b, k_ids = jax.random.split(key, 4)

    # Deterministic "pretrained" embedding + fc params (synthetic, not a checkpoint).
    emb_table = jax.random.normal(k_emb, (VOCAB, EMB_DIM), dtype=jnp.float32)
    fc_w = jax.random.normal(k_w, (1, EMB_DIM), dtype=jnp.float32) * 0.1
    fc_b = jax.random.normal(k_b, (1,), dtype=jnp.float32) * 0.1

    x_ids = jax.random.randint(k_ids, (SEQ, BATCH), 0, VOCAB, dtype=jnp.int32)
    lens = jnp.full((BATCH,), SEQ, dtype=jnp.int32)        # unused, interface parity

    # Parameter-load-time fold (done ONCE, outside the per-call forward).
    proj = jax.block_until_ready(fold_params(emb_table, fc_w))

    fwd = jax.jit(baseline_forward)
    out = jax.block_until_ready(fwd(x_ids, proj, fc_b, lens))

    ref = reference_forward(x_ids, emb_table, fc_w, fc_b)
    assert out.shape == (BATCH,)
    assert jnp.allclose(out, ref, atol=1e-4, rtol=1e-4), (out, ref)

    print("KERNEL_OK")
</pallas_src>

<mosaic_0001>
module attributes {stable_mosaic.version = 11 : i64} {
  func.func @kernel(%arg0: i32, %arg1: i32, %arg2: memref<8x4xi32, #tpu.memory_space<smem>>, %arg3: memref<64xf32, #tpu.memory_space<smem>>, %arg4: memref<1x1xf32, #tpu.memory_space<smem>>, %arg5: memref<1x1x4xf32, #tpu.memory_space<vmem>>) attributes {dimension_semantics = [#tpu.dimension_semantics<parallel>, #tpu.dimension_semantics<parallel>], iteration_bounds = array<i64: 2, 1>, scalar_prefetch = 0 : i64, scratch_operands = 0 : i64, tpu.core_type = #tpu.core_type<tc>, window_params = [{transform_indices = @transform_0, window_bounds = array<i64: 8, 4>}, {transform_indices = @transform_1, window_bounds = array<i64: 64>}, {transform_indices = @transform_2, window_bounds = array<i64: 1, 1>}, {transform_indices = @transform_3, window_bounds = array<i64: 1, 1, 4>}]} {
    %c4_i32 = arith.constant 4 : i32
    %0 = arith.muli %arg0, %c4_i32 : i32
    %1 = tpu.iota {dimensions = array<i32: 2>} : vector<1x1x4xi32>
    %cst = arith.constant 0.000000e+00 : f32
    %2 = vector.broadcast %cst : f32 to vector<1x1x4xf32>
    %c0_i32 = arith.constant 0 : i32
    %c4_i32_0 = arith.constant 4 : i32
    %3 = arith.addi %c0_i32, %c4_i32_0 : i32
    %c1_i32 = arith.constant 1 : i32
    %4 = scf.for %arg6 = %c0_i32 to %3 step %c1_i32 iter_args(%arg7 = %2) -> (vector<1x1x4xf32>)  : i32 {
      %c4_i32_8 = arith.constant 4 : i32
      %11 = arith.muli %arg1, %c4_i32_8 : i32
      %12 = arith.addi %11, %arg6 : i32
      %cst_9 = arith.constant 0.000000e+00 : f32
      %c0_i32_10 = arith.constant 0 : i32
      %13 = arith.addi %0, %c0_i32_10 : i32
      %14 = arith.index_cast %13 : i32 to index
      %15 = arith.index_cast %12 : i32 to index
      %16 = memref.load %arg2[%14, %15] : memref<8x4xi32, #tpu.memory_space<smem>>
      %17 = arith.index_cast %16 : i32 to index
      %18 = memref.load %arg3[%17] : memref<64xf32, #tpu.memory_space<smem>>
      %19 = arith.addf %cst_9, %18 : f32
      %c1_i32_11 = arith.constant 1 : i32
      %20 = arith.addi %0, %c1_i32_11 : i32
      %21 = arith.index_cast %20 : i32 to index
      %22 = arith.index_cast %12 : i32 to index
      %23 = memref.load %arg2[%21, %22] : memref<8x4xi32, #tpu.memory_space<smem>>
      %24 = arith.index_cast %23 : i32 to index
      %25 = memref.load %arg3[%24] : memref<64xf32, #tpu.memory_space<smem>>
      %26 = arith.addf %19, %25 : f32
      %c2_i32 = arith.constant 2 : i32
      %27 = arith.addi %0, %c2_i32 : i32
      %28 = arith.index_cast %27 : i32 to index
      %29 = arith.index_cast %12 : i32 to index
      %30 = memref.load %arg2[%28, %29] : memref<8x4xi32, #tpu.memory_space<smem>>
      %31 = arith.index_cast %30 : i32 to index
      %32 = memref.load %arg3[%31] : memref<64xf32, #tpu.memory_space<smem>>
      %33 = arith.addf %26, %32 : f32
      %c3_i32 = arith.constant 3 : i32
      %34 = arith.addi %0, %c3_i32 : i32
      %35 = arith.index_cast %34 : i32 to index
      %36 = arith.index_cast %12 : i32 to index
      %37 = memref.load %arg2[%35, %36] : memref<8x4xi32, #tpu.memory_space<smem>>
      %38 = arith.index_cast %37 : i32 to index
      %39 = memref.load %arg3[%38] : memref<64xf32, #tpu.memory_space<smem>>
      %40 = arith.addf %33, %39 : f32
      %c4_i32_12 = arith.constant 4 : i32
      %41 = vector.broadcast %arg6 : i32 to vector<1x1x4xi32>
      %42 = arith.cmpi eq, %1, %41 : vector<1x1x4xi32>
      %cst_13 = arith.constant 1.250000e-01 : f32
      %43 = arith.mulf %40, %cst_13 : f32
      %44 = vector.broadcast %43 : f32 to vector<1x1x4xf32>
      %45 = arith.select %42, %44, %arg7 : vector<1x1x4xi1>, vector<1x1x4xf32>
      scf.yield %45 : vector<1x1x4xf32>
    }
    %c4_i32_1 = arith.constant 4 : i32
    %c0_i32_2 = arith.constant 0 : i32
    %5 = arith.cmpi eq, %arg0, %c0_i32_2 : i32
    %c0 = arith.constant 0 : index
    %c0_3 = arith.constant 0 : index
    %6 = memref.load %arg4[%c0, %c0_3] : memref<1x1xf32, #tpu.memory_space<smem>>
    %cst_4 = arith.constant 0.000000e+00 : f32
    %7 = arith.select %5, %6, %cst_4 : f32
    %8 = vector.broadcast %7 : f32 to vector<1x1x4xf32>
    %9 = arith.addf %4, %8 : vector<1x1x4xf32>
    %c0_5 = arith.constant 0 : index
    %c0_6 = arith.constant 0 : index
    %c0_7 = arith.constant 0 : index
    %10 = vector.load %arg5[%c0_5, %c0_6, %c0_7] : memref<1x1x4xf32, #tpu.memory_space<vmem>>, vector<1x1x4xf32>
    tpu.vector_store %arg5[%c0_5, %c0_6, %c0_7], %9 {strides = array<i32>} : memref<1x1x4xf32, #tpu.memory_space<vmem>>, vector<1x1x4xf32>,
    return
  }
  func.func @transform_0(%arg0: i32, %arg1: i32) -> (i32, i32) {
    %c0_i32 = arith.constant 0 : i32
    %c0_i32_0 = arith.constant 0 : i32
    %c0_i32_1 = arith.constant 0 : i32
    return %c0_i32, %c0_i32_0 : i32, i32
  }
  func.func @transform_1(%arg0: i32, %arg1: i32) -> i32 {
    %c0_i32 = arith.constant 0 : i32
    %c0_i32_0 = arith.constant 0 : i32
    return %c0_i32 : i32
  }
  func.func @transform_2(%arg0: i32, %arg1: i32) -> (i32, i32) {
    %c0_i32 = arith.constant 0 : i32
    %c0_i32_0 = arith.constant 0 : i32
    %c0_i32_1 = arith.constant 0 : i32
    return %c0_i32, %c0_i32_0 : i32, i32
  }
  func.func @transform_3(%arg0: i32, %arg1: i32) -> (i32, i32, i32) {
    %c0_i32 = arith.constant 0 : i32
    %c0_i32_0 = arith.constant 0 : i32
    return %arg0, %c0_i32, %arg1 : i32, i32, i32
  }
}

</mosaic_0001>

<bundles_post_ra>
// kernel: baseline_forward.1
= control target key start
LH: loop header
LB: loop body
LE: loop exit
PB: predicated region body
PF: predicated region fallthrough
CT: control target
= control target key end

     0   :  { %s613_s0 = inlined_call_operand.vmem [shape: s32[8,4], index: 0, kind: input, shape index: {}]   ;;  %s614_s1 = inlined_call_operand.vmem [shape: f32[64], index: 1, kind: input, shape index: {}]   ;;  %s615_s2 = inlined_call_operand.<no memory space> [shape: f32[1,1], index: 2, kind: input, shape index: {}]   ;;  %s616_s3 = inlined_call_operand.vmem [shape: f32[2,1,4], index: 3, kind: output, shape index: {}]  }
   0x1   :  { %620 = sst [smem:[#allocation10_spill]] %s613_s0 }
   0x2   :  { %621 = sst [smem:[#allocation11_spill]] %s614_s1 }
   0x3   :  { %8 = sst [smem:[#allocation2]] %s615_s2 }
   0x4   :  { %9 = vsyncpa [#allocation4], 0 }
   0x5   :  { %10 = vsyncpa [#allocation6], 0  ;;  %s513_s14 = smov 0   ;;  %s515_s15 = smov 0  }
   0x6   :  { %s517_s16 = smov 0  }
   0x7 LB: > { %s334_s2 = sadd.s32 4294967295, %s478_s16   ;;  %s28_s17 = sadd.s32 1, %s474_s15  ;;  %s478_s16 = sphi %s517_s16, %s16_s16   ;;  %s474_s15 = sphi %s515_s15, %s633_s15   ;;  %s470_s14 = sphi %s513_s14, %s632_s14  }
   0x8   : > { %p30_p0 = scmp.ge.s32.totalorder %s28_s17, 2  ;;  %p336_p1 = scmp.ge.s32.totalorder %s478_s16, 1 }
   0x9   : > { %p124_p2 = scmp.lt.s32.totalorder %s478_s16, 3  ;;  %p538_p4 = scmp.eq.s32.totalorder %s334_s2, 0 }
   0xa   : > { %s635_s17 = smov (%p30_p0, %s28_s17), 0  ;;  %s625_s0 = sld [smem:[#allocation10_spill]] }
   0xb   : > { %622 = sst [smem:[#allocation9_spill]] %s635_s17  ;;  %p534_p3 = pnand %p336_p1, %p124_p2 }
   0xc   : > { %s624_s19 = scalar_select %p538_p4, 1, 0 }
   0xd   : > { %s623_s18 = scalar_select %p534_p3, 1, 0 }
   0xe   : > { %p357_p5 = pneg %p534_p3  ;;  %s626_s1 = sld [smem:[#allocation11_spill]] }
  0x10   : > { %s137_s22 = sshll.u32 %s625_s0, 4  ;;  %p552_p6 = pnand %p538_p4, %p357_p5  ;;  %s138_s22 = int_to_ptr.vmem [resolvable:$true] %s137_s22 }
  0x11   : > { %s410_s27 = scalar_lea.vmem %s138_s22, 128  ;;  %p418_p11 = scmp.lt.s32.totalorder %s138_s22, %s138_s22 }
  0x12   : > { %p411_p7 = scmp.ne.s32.totalorder %s138_s22, %s410_s27  ;;  %p412_p8 = pneg %p552_p6 }
  0x13   : > { %p419_p12 = scmp.lt.s32.totalorder %s410_s27, %s410_s27 }
  0x14   : > { %s148_s25 = sshll.u32 %s626_s1, 4  ;;  %p413_p9 = pnand %p412_p8, %p411_p7  ;;  %s149_s25 = int_to_ptr.vmem [resolvable:$true] %s148_s25 }
  0x15   : > { %p420_p13 = por %p419_p12, %p418_p11 }
  0x16   : > { %p414_p10 = pneg %p413_p9 }
  0x18   : > { %p421_p0 = pnand %p420_p13, %p414_p10 }
  0x1a   : > { %424 = shalt.err (!%p421_p0)
}
  0x1b   : > { %s488_s28 = smov [#allocation3]   ;;  %s425_s29 = scalar_lea.vmem %s149_s25, 16 }
  0x1c   : > { %360 = dma.vmem_to_smem (!%p552_p6), %s138_s22, 128, %s488_s28, [#allocation4]  }
  0x1d   : > { %p426_p1 = scmp.ne.s32.totalorder %s149_s25, %s425_s29  ;;  %p433_p4 = scmp.lt.s32.totalorder %s149_s25, %s149_s25 }
  0x1e   : > { %p434_p3 = scmp.lt.s32.totalorder %s425_s29, %s425_s29 }
  0x1f   : > { %p428_p2 = pnand %p426_p1, %p412_p8 }
  0x20   : > { %p435_p7 = por %p434_p3, %p433_p4 }
  0x21   : > { %p429_p5 = pneg %p428_p2 }
  0x23   : > { %p436_p9 = pnand %p435_p7, %p429_p5 }
  0x25   : > { %439 = shalt.err (!%p436_p9)
}
  0x26   : > { %s489_s30 = smov [#allocation5]   ;;  %p628_p10 = scmp.ne.s32.totalorder %s623_s18, 0 }
  0x27   : > { %363 = dma.vmem_to_smem (!%p552_p6), %s149_s25, 16, %s489_s30, [#allocation6]  }
  0x28   : > { %164 = sbr.rel (%p628_p10) target bundleno = 90 (0x5a), region = 32  ;;  %p629_p11 = scmp.ne.s32.totalorder (!%p628_p10), %s624_s19, 0 }
  0x2f   : > { %461 = dma.done.wait (%p629_p11), [#allocation4], 128  }
  0x30   : > { %463 = vsyncadd (%p629_p11), [#allocation4], 4294967168 }
  0x31   : > { %465 = dma.done.wait (%p629_p11), [#allocation6], 16  }
  0x32   : > { %467 = vsyncadd (%p629_p11), [#allocation6], 4294967280 }
  0x33   : > { %174 = sfence }
  0x34   : > { %p189_p3 = scmp.lt.s32.totalorder %s470_s14, 1  ;;  %s574_s4 = sshll.u32 %s470_s14, 2  ;;  %v196_v0 = vlaneseq  ;;  %v480_v2 = vmov 0.0  }
  0x35   : > { %s583_s9 = smov 0  }
  0x36   : > { %s577_s5 = scalar_select %p189_p3, %s470_s14, 1  ;;  %v197_v1 = vand.u32 127, %v196_v0 }
  0x37 LB: >> { %s217_s10 = sadd.s32 1, %s574_s4  ;;  %s224_s11 = sadd.s32 2, %s574_s4  ;;  %v238_v3 = vstv %s486_s9  ;;  %s486_s9 = sphi %s583_s9, %s203_s9   ;;  %v482_v2 = vphi %v480_v2, %v481_v2  }
  0x38   : >> { %s207_s12 = sshra.s32 %s486_s9, 7  ;;  %s212_s13 = sand.u32 127, %s486_s9  ;;  %vm239_vm0 = vcmp.eq.s32.totalorder %v197_v1, %v238_v3 }
  0x39   : >> { %s209_s2 = sadd.s32 %s574_s4, %s207_s12  ;;  %s218_s18 = sadd.s32 %s217_s10, %s207_s12 }
  0x3a   : >> { %s343_s19 = sshll.u32 %s209_s2, 7  ;;  %s344_s20 = sshll.u32 %s218_s18, 7 }
  0x3b   : >> { %s213_s21 = sadd.s32 %s343_s19, %s212_s13  ;;  %s220_s22 = sadd.s32 %s344_s20, %s212_s13 }
  0x3c   : >> { %s214_s23 = sld [smem:[#allocation3 + %s213_s21]]  ;;  %s225_s25 = sadd.s32 %s224_s11, %s207_s12 }
  0x3d   : >> { %s221_s24 = sld [smem:[#allocation3 + %s220_s22]]  ;;  %s231_s26 = sadd.s32 3, %s574_s4 }
  0x3e   : >> { %s345_s27 = sshll.u32 %s225_s25, 7  ;;  %s232_s28 = sadd.s32 %s231_s26, %s207_s12 }
  0x3f   : >> { %s227_s29 = sadd.s32 %s345_s27, %s212_s13  ;;  %s346_s30 = sshll.u32 %s232_s28, 7 }
  0x40   : >> { %s228_s6 = sld [smem:[#allocation3 + %s227_s29]]  ;;  %s234_s7 = sadd.s32 %s346_s30, %s212_s13 }
  0x41   : >> { %s235_s8 = sld [smem:[#allocation3 + %s234_s7]]  ;;  %s203_s9 = sadd.s32 1, %s486_s9  }
  0x42   : >> { %s215_s0 = sld [smem:[#allocation5 + %s214_s23]]  ;;  %p200_p4 = scmp.ge.s32.totalorder %s203_s9, 4  }
  0x43   : >> { %s222_s1 = sld [smem:[#allocation5 + %s221_s24]]  ;;  %p243_p6 = scmp.eq.s32.totalorder (%p200_p4), %s470_s14, 0  ;;  %vm248_vm1 = vcmask (%p200_p4), 24576  }
  0x44   : > { %s244_s11 = sld [smem:[#allocation2]] (%p200_p4) }
  0x46   : >> { %s229_s17 = sld [smem:[#allocation5 + %s228_s6]] }
  0x47   : >> { %s236_s10 = sld [smem:[#allocation5 + %s235_s8]] }
  0x49   : >> { %s223_s2 = sadd.f32 %s222_s1, %s215_s0 }
  0x4c   : >> { %s230_s18 = sadd.f32 %s229_s17, %s223_s2  ;;  %s630_s17 = scalar_lea.vmem (%p200_p4), %s616_s3, %s577_s5 }
  0x4e   : >> { %s237_s19 = sadd.f32 %s236_s10, %s230_s18  ;;  %202 = sbr.rel (!%p200_p4) target bundleno = 55 (0x37), region = 75 }
  0x50   : >> { %s240_s20 = smul.f32 0.125, %s237_s19 }
  0x52   : >> { %v241_v4 = vstv %s240_s20 }
  0x53   : >> { %v242_v5 = vsel %vm239_vm0, %v241_v4, %v482_v2  }
  0x54   : >> { %v481_v2 = vmov %v242_v5  }
  0x55   : > { %s637_s11 = smov (!%p243_p6, %s244_s11), 0.0 }
  0x56   : > { %v246_v6 = vstv %s637_s11 }
  0x57   : > { %v247_v7 = vadd.f32 %v246_v6, %v242_v5 }
  0x59   : > { %249 = vst.msk [vmem:[%s630_s17] sm:$0x1] %vm248_vm1, %v247_v7 }
  0x5a PF: > { %s16_s16 = sadd.s32 1, %s478_s16   ;;  %s631_s8 = sld [smem:[#allocation9_spill]] }
  0x5b   : > { %p13_p8 = scmp.ge.s32.totalorder %s16_s16, 4   ;;  %s632_s14 = smov %s474_s15 }
  0x5d   :  { %15 = sbr.rel (!%p13_p8) target bundleno = 7 (0x7), region = 86 }
  0x60   : > { %s633_s15 = smov %s631_s8 }
  0x64   :  { %273 = vsyncpa [#allocation4], 1 }
  0x65   :  { %275 = vsyncpa [#allocation4 + $0x1], 1 }
  0x66   :  { %276 = vsyncpa [#allocation6], 1 }

</bundles_post_ra>
